<compile_context>
chip_gen: v7x
topology: tpu7x:2x2x1
jax: 0.10.0
libtpu: 0.0.40
codegen_flags: <defaults>
</compile_context>

<pallas_src>
import functools

import jax
import jax.numpy as jnp
from jax import lax
from jax.experimental import pallas as pl
from jax.experimental.pallas import tpu as pltpu


def _sobelxy_kernel(x_ref, o_ref, *, W):
    """x_ref / o_ref: (BC, H*W) tiles; each row is one image flattened on lanes."""
    x = x_ref[...].astype(jnp.float32)        # f32 compute; storage may be bf16
    _, L = x.shape                            # L == H * W

    # Lane-only edge masks, built once from a (1, L) iota and broadcast inside
    # jnp.where -- no (BC, L) int32 temporaries, no per-where recompute.
    li = lax.broadcasted_iota(jnp.int32, (1, L), 1)            # flat pixel index
    col = (li & (W - 1)) if (W & (W - 1)) == 0 else (li % W)   # column index
    not_left = col > 0
    not_right = col < W - 1
    not_top = li >= W
    not_bot = li < L - W

    # roll(x, s)[p] == x[p - s]; wrap-around is masked away (zero padding).
    xl = jnp.where(not_left, pltpu.roll(x, shift=1, axis=1), 0.0)        # x[h, w-1]
    xr = jnp.where(not_right, pltpu.roll(x, shift=L - 1, axis=1), 0.0)   # x[h, w+1]

    def up(y):   # y[h-1, w], zero above the top row
        return jnp.where(not_top, pltpu.roll(y, shift=W % L, axis=1), 0.0)

    def dn(y):   # y[h+1, w], zero below the bottom row
        return jnp.where(not_bot, pltpu.roll(y, shift=(L - W) % L, axis=1), 0.0)

    # Separable Sobel; consume h_diff (convx path) before building h_sum
    # (convy path) to keep fewer block-sized temporaries live.
    h_diff = xl - xr                                         # row [1, 0, -1]
    out = jnp.abs(up(h_diff) + 2.0 * h_diff + dn(h_diff))    # |convx|
    h_sum = xl + 2.0 * x + xr                                # row [1, 2, 1]
    out = out + jnp.abs(up(h_sum) - dn(h_sum))               # + |convy|

    o_ref[...] = out.astype(o_ref.dtype)


def _pick_block_rows(nc, L, itemsize, budget_bytes, target_steps=8):
    """Rows (flattened N*C channels) per grid step.

    BC no longer has to divide nc: it is a multiple of 8 (or the full extent
    when nc <= 8) and the grid uses cdiv, so awkward nc values (12, 8*prime,
    ...) still pipeline and shard across v7x's two TensorCores.  We aim for
    >= `target_steps` grid steps (>= 3-4 per v7x core) and keep one block
    within `budget_bytes`.
    """
    if nc <= 8:
        # Full-extent sublane dim is always Mosaic-legal; nothing smaller is.
        return nc
    max_rows = budget_bytes // (L * itemsize)
    if max_rows < 8:
        # TODO(synk): tile H (with a 1-row halo) for huge single-image rows
        # instead of exceeding the budget; for now take the smallest legal
        # block and let the wrapper scale vmem_limit_bytes (capped).
        bc_budget = 8
    else:
        bc_budget = (max_rows // 8) * 8
    bc_steps = max(8, (pl.cdiv(nc, target_steps) // 8) * 8)
    return min(bc_budget, bc_steps)


@functools.partial(jax.jit, static_argnames=("block_budget_bytes",))
def sobelxy(x, *, block_budget_bytes=512 * 1024):
    """x: (N, C, H, W) float32/bfloat16 -> same shape/dtype."""
    N, C, H, W = x.shape
    nc, L = N * C, H * W
    itemsize = jnp.dtype(x.dtype).itemsize

    x2 = x.reshape(nc, L)          # contiguous reshape; free under jit
    BC = _pick_block_rows(nc, L, itemsize, block_budget_bytes)
    grid = (pl.cdiv(nc, BC),)

    block_bytes = BC * L * itemsize
    # ~10 live block-sized f32 temporaries + double-buffered I/O: 32 MiB is
    # ample for <=1 MiB blocks; scale (capped well under v7x's 64 MiB physical
    # VMEM) only if the fallback ever picks an over-budget block.
    vmem_limit = int(min(64 * 1024 * 1024,
                         max(32 * 1024 * 1024, 20 * block_bytes)))

    kernel = functools.partial(_sobelxy_kernel, W=W)
    out = pl.pallas_call(
        kernel,
        out_shape=jax.ShapeDtypeStruct((nc, L), x.dtype),
        grid_spec=pltpu.PrefetchScalarGridSpec(
            num_scalar_prefetch=0,
            grid=grid,
            in_specs=[pl.BlockSpec((BC, L), lambda i: (i, 0))],
            out_specs=pl.BlockSpec((BC, L), lambda i: (i, 0)),
        ),
        compiler_params=pltpu.CompilerParams(
            dimension_semantics=("parallel",),
            vmem_limit_bytes=vmem_limit,
        ),
        cost_estimate=pl.CostEstimate(
            flops=11 * nc * L,
            transcendentals=0,
            bytes_accessed=2 * nc * L * itemsize,
        ),
    )(x2)
    return out.reshape(N, C, H, W)


def _reference(x):
    """Plain-JAX reference using depthwise conv (matches PyTorch Conv2d)."""
    N, C, H, W = x.shape
    sobel = jnp.array([[1., 0., -1.], [2., 0., -2.], [1., 0., -1.]], x.dtype)
    wx = jnp.broadcast_to(sobel, (C, 1, 3, 3))
    wy = jnp.broadcast_to(sobel.T, (C, 1, 3, 3))
    dn = lax.conv_dimension_numbers(x.shape, wx.shape, ("NCHW", "OIHW", "NCHW"))
    convx = lax.conv_general_dilated(x, wx, (1, 1), ((1, 1), (1, 1)),
                                     dimension_numbers=dn,
                                     feature_group_count=C)
    convy = lax.conv_general_dilated(x, wy, (1, 1), ((1, 1), (1, 1)),
                                     dimension_numbers=dn,
                                     feature_group_count=C)
    return jnp.abs(convx) + jnp.abs(convy)


if __name__ == "__main__":
    key = jax.random.PRNGKey(0)

    # Primary shape from the module spec.
    x = jax.random.normal(key, (2, 4, 16, 16), dtype=jnp.float32)
    y = sobelxy(x)
    jax.block_until_ready(y)
    y_ref = _reference(x)
    assert y.shape == x.shape
    assert jnp.allclose(y, y_ref, atol=1e-5, rtol=1e-5), "mismatch vs reference"

    # Ragged-nc shape (nc=15, BC=8, cdiv grid=2) to exercise the masked last block.
    x2 = jax.random.normal(jax.random.PRNGKey(1), (3, 5, 16, 16), dtype=jnp.float32)
    y2 = sobelxy(x2)
    jax.block_until_ready(y2)
    assert jnp.allclose(y2, _reference(x2), atol=1e-5, rtol=1e-5), "ragged mismatch"

    print("KERNEL_OK")
</pallas_src>

<mosaic_0001>
module attributes {stable_mosaic.version = 11 : i64} {
  func.func @_sobelxy_kernel(%arg0: i32, %arg1: memref<8x256xf32, #tpu.memory_space<vmem>>, %arg2: memref<8x256xf32, #tpu.memory_space<vmem>>) attributes {dimension_semantics = [#tpu.dimension_semantics<parallel>], iteration_bounds = array<i64: 1>, scalar_prefetch = 0 : i64, scratch_operands = 0 : i64, tpu.core_type = #tpu.core_type<tc>, window_params = [{transform_indices = @transform_0, window_bounds = array<i64: 8, 256>}, {transform_indices = @transform_1, window_bounds = array<i64: 8, 256>}]} {
    %c0 = arith.constant 0 : index
    %c0_0 = arith.constant 0 : index
    %0 = vector.load %arg1[%c0, %c0_0] : memref<8x256xf32, #tpu.memory_space<vmem>>, vector<8x256xf32>
    %1 = tpu.iota {dimensions = array<i32: 1>} : vector<1x256xi32>
    %c15_i32 = arith.constant 15 : i32
    %2 = vector.broadcast %c15_i32 : i32 to vector<1x256xi32>
    %3 = arith.andi %1, %2 : vector<1x256xi32>
    %c0_i32 = arith.constant 0 : i32
    %4 = vector.broadcast %c0_i32 : i32 to vector<1x256xi32>
    %5 = arith.cmpi sgt, %3, %4 : vector<1x256xi32>
    %c15_i32_1 = arith.constant 15 : i32
    %6 = vector.broadcast %c15_i32_1 : i32 to vector<1x256xi32>
    %7 = arith.cmpi slt, %3, %6 : vector<1x256xi32>
    %c16_i32 = arith.constant 16 : i32
    %8 = vector.broadcast %c16_i32 : i32 to vector<1x256xi32>
    %9 = arith.cmpi sge, %1, %8 : vector<1x256xi32>
    %c240_i32 = arith.constant 240 : i32
    %10 = vector.broadcast %c240_i32 : i32 to vector<1x256xi32>
    %11 = arith.cmpi slt, %1, %10 : vector<1x256xi32>
    %c1_i32 = arith.constant 1 : i32
    %12 = tpu.dynamic_rotate %0 by %c1_i32 dim 1 : vector<8x256xf32>, i32 -> vector<8x256xf32>
    %cst = arith.constant 0.000000e+00 : f32
    %13 = vector.shape_cast %5 : vector<1x256xi1> to vector<1x256xi1>
    %14 = vector.broadcast %13 : vector<1x256xi1> to vector<8x256xi1>
    %15 = vector.broadcast %cst : f32 to vector<8x256xf32>
    %16 = arith.select %14, %12, %15 : vector<8x256xi1>, vector<8x256xf32>
    %c255_i32 = arith.constant 255 : i32
    %17 = tpu.dynamic_rotate %0 by %c255_i32 dim 1 : vector<8x256xf32>, i32 -> vector<8x256xf32>
    %cst_2 = arith.constant 0.000000e+00 : f32
    %18 = vector.shape_cast %7 : vector<1x256xi1> to vector<1x256xi1>
    %19 = vector.broadcast %18 : vector<1x256xi1> to vector<8x256xi1>
    %20 = vector.broadcast %cst_2 : f32 to vector<8x256xf32>
    %21 = arith.select %19, %17, %20 : vector<8x256xi1>, vector<8x256xf32>
    %22 = arith.subf %16, %21 : vector<8x256xf32>
    %c16_i32_3 = arith.constant 16 : i32
    %23 = tpu.dynamic_rotate %22 by %c16_i32_3 dim 1 : vector<8x256xf32>, i32 -> vector<8x256xf32>
    %cst_4 = arith.constant 0.000000e+00 : f32
    %24 = vector.shape_cast %9 : vector<1x256xi1> to vector<1x256xi1>
    %25 = vector.broadcast %24 : vector<1x256xi1> to vector<8x256xi1>
    %26 = vector.broadcast %cst_4 : f32 to vector<8x256xf32>
    %27 = arith.select %25, %23, %26 : vector<8x256xi1>, vector<8x256xf32>
    %cst_5 = arith.constant 2.000000e+00 : f32
    %28 = vector.broadcast %cst_5 : f32 to vector<8x256xf32>
    %29 = arith.mulf %28, %22 : vector<8x256xf32>
    %30 = arith.addf %27, %29 : vector<8x256xf32>
    %c240_i32_6 = arith.constant 240 : i32
    %31 = tpu.dynamic_rotate %22 by %c240_i32_6 dim 1 : vector<8x256xf32>, i32 -> vector<8x256xf32>
    %cst_7 = arith.constant 0.000000e+00 : f32
    %32 = vector.shape_cast %11 : vector<1x256xi1> to vector<1x256xi1>
    %33 = vector.broadcast %32 : vector<1x256xi1> to vector<8x256xi1>
    %34 = vector.broadcast %cst_7 : f32 to vector<8x256xf32>
    %35 = arith.select %33, %31, %34 : vector<8x256xi1>, vector<8x256xf32>
    %36 = arith.addf %30, %35 : vector<8x256xf32>
    %37 = math.absf %36 : vector<8x256xf32>
    %cst_8 = arith.constant 2.000000e+00 : f32
    %38 = vector.broadcast %cst_8 : f32 to vector<8x256xf32>
    %39 = arith.mulf %38, %0 : vector<8x256xf32>
    %40 = arith.addf %16, %39 : vector<8x256xf32>
    %41 = arith.addf %40, %21 : vector<8x256xf32>
    %c16_i32_9 = arith.constant 16 : i32
    %42 = tpu.dynamic_rotate %41 by %c16_i32_9 dim 1 : vector<8x256xf32>, i32 -> vector<8x256xf32>
    %cst_10 = arith.constant 0.000000e+00 : f32
    %43 = vector.shape_cast %9 : vector<1x256xi1> to vector<1x256xi1>
    %44 = vector.broadcast %43 : vector<1x256xi1> to vector<8x256xi1>
    %45 = vector.broadcast %cst_10 : f32 to vector<8x256xf32>
    %46 = arith.select %44, %42, %45 : vector<8x256xi1>, vector<8x256xf32>
    %c240_i32_11 = arith.constant 240 : i32
    %47 = tpu.dynamic_rotate %41 by %c240_i32_11 dim 1 : vector<8x256xf32>, i32 -> vector<8x256xf32>
    %cst_12 = arith.constant 0.000000e+00 : f32
    %48 = vector.shape_cast %11 : vector<1x256xi1> to vector<1x256xi1>
    %49 = vector.broadcast %48 : vector<1x256xi1> to vector<8x256xi1>
    %50 = vector.broadcast %cst_12 : f32 to vector<8x256xf32>
    %51 = arith.select %49, %47, %50 : vector<8x256xi1>, vector<8x256xf32>
    %52 = arith.subf %46, %51 : vector<8x256xf32>
    %53 = math.absf %52 : vector<8x256xf32>
    %54 = arith.addf %37, %53 : vector<8x256xf32>
    %c0_13 = arith.constant 0 : index
    %c0_14 = arith.constant 0 : index
    %55 = vector.load %arg2[%c0_13, %c0_14] : memref<8x256xf32, #tpu.memory_space<vmem>>, vector<8x256xf32>
    tpu.vector_store %arg2[%c0_13, %c0_14], %54 {strides = array<i32>} : memref<8x256xf32, #tpu.memory_space<vmem>>, vector<8x256xf32>,
    return
  }
  func.func @transform_0(%arg0: i32) -> (i32, i32) {
    %c0_i32 = arith.constant 0 : i32
    %c0_i32_0 = arith.constant 0 : i32
    return %arg0, %c0_i32 : i32, i32
  }
  func.func @transform_1(%arg0: i32) -> (i32, i32) {
    %c0_i32 = arith.constant 0 : i32
    %c0_i32_0 = arith.constant 0 : i32
    return %arg0, %c0_i32 : i32, i32
  }
}

</mosaic_0001>

<bundles_post_ra>
// kernel: sobelxy.1
= control target key start
LH: loop header
LB: loop body
LE: loop exit
PB: predicated region body
PF: predicated region fallthrough
CT: control target
= control target key end

     0   :  { %s123_s8 = smov 127   ;;  %s124_s9 = smov 1   ;;  %v10_v2 = vlaneseq  ;;  %s186_s0 = inlined_call_operand.vmem [shape: f32[8,256], index: 0, kind: input, shape index: {}]   ;;  %s187_s1 = inlined_call_operand.vmem [shape: f32[8,256], index: 1, kind: output, shape index: {}]  }
   0x1   :  { %v8_v0 = vld [vmem:[%s186_s0] sm:$0xff]  ;;  %v9_v1 = vld [vmem:[%s186_s0 + $0x8] sm:$0xff]  ;;  %s125_s0 = smov 16   ;;  %s126_s12 = smov 112  }
   0x2   :  { %36 = vrot.lane.b32.xlu1 %v8_v0, %s123_s8  ;;  %23 = vrot.lane.b32.xlu0 %v8_v0, %s124_s9  ;;  %v143_v3 = vand.u32 127, %v10_v2  ;;  %v85_v19 = vmul.f32 2.0, %v8_v0  ;;  %v86_v20 = vmul.f32 2.0, %v9_v1 }
   0x4   :  { %v146_v4 = vadd.s32 128, %v143_v3  ;;  %v13_v5 = vand.u32 15, %v143_v3  ;;  %vm40_vm0 = vcmp.lt.s32.totalorder %v143_v3, 127  ;;  %vm27_vm1 = vcmp.lt.s32.totalorder %v143_v3, 1 }
   0x5   :  { %vm55_vm6 = vcmp.lt.s32.totalorder %v143_v3, 16  ;;  %vm19_vm7 = vcmp.ge.s32.totalorder %v143_v3, 16  ;;  %vm72_vm8 = vcmp.lt.s32.totalorder %v143_v3, 112 }
   0x6   :  { %38 = vrot.lane.b32.xlu1 %v9_v1, %s123_s8  ;;  %25 = vrot.lane.b32.xlu0 %v9_v1, %s124_s9  ;;  %v14_v6 = vand.u32 15, %v146_v4  ;;  %vm17_vm2 = vcmp.lt.s32.totalorder %v13_v5, 15  ;;  %vm15_vm4 = vcmp.gt.s32.totalorder %v13_v5, 0  ;;  %vm22_vm9 = vcmp.lt.s32.totalorder %v146_v4, 240 }
   0x8   :  { %vm18_vm3 = vcmp.lt.s32.totalorder %v14_v6, 15  ;;  %vm16_vm5 = vcmp.gt.s32.totalorder %v14_v6, 0 }
  0x74   :  { %v37_v7 = vpop.permute.xlu1 %36  ;;  %v24_v8 = vpop.permute.xlu0 %23 }
  0x78   :  { %v39_v9 = vpop.permute.xlu1 %38  ;;  %v26_v10 = vpop.permute.xlu0 %25 }
  0x79   :  { %v41_v11 = vsel %vm40_vm0, %v37_v7, %v39_v9  ;;  %v42_v12 = vsel %vm40_vm0, %v39_v9, %v37_v7  ;;  %v28_v13 = vsel %vm27_vm1, %v24_v8, %v26_v10  ;;  %v29_v14 = vsel %vm27_vm1, %v26_v10, %v24_v8 }
  0x7a   :  { %v47_v15 = vsel %vm17_vm2, %v41_v11, 0.0  ;;  %v48_v16 = vsel %vm18_vm3, %v42_v12, 0.0  ;;  %v34_v17 = vsel %vm15_vm4, %v29_v14, 0.0  ;;  %v35_v18 = vsel %vm16_vm5, %v28_v13, 0.0 }
  0x7b   :  { %v49_v21 = vsub.f32 %v34_v17, %v47_v15  ;;  %v50_v22 = vsub.f32 %v35_v18, %v48_v16  ;;  %v87_v23 = vadd.f32 %v85_v19, %v34_v17  ;;  %v88_v24 = vadd.f32 %v86_v20, %v35_v18 }
  0x7d   :  { %51 = vrot.lane.b32.xlu0 %v49_v21, %s125_s0  ;;  %53 = vrot.lane.b32.xlu1 %v50_v22, %s125_s0  ;;  %v90_v25 = vadd.f32 %v88_v24, %v48_v16  ;;  %v89_v26 = vadd.f32 %v87_v23, %v47_v15  ;;  %v64_v33 = vmul.f32 2.0, %v49_v21  ;;  %v65_v39 = vmul.f32 2.0, %v50_v22 }
  0x81   :  { %68 = vrot.lane.b32.xlu0 %v49_v21, %s126_s12  ;;  %70 = vrot.lane.b32.xlu1 %v50_v22, %s126_s12 }
  0x85   :  { %93 = vrot.lane.b32.xlu1 %v90_v25, %s125_s0  ;;  %91 = vrot.lane.b32.xlu0 %v89_v26, %s125_s0 }
  0x89   :  { %101 = vrot.lane.b32.xlu1 %v90_v25, %s126_s12  ;;  %99 = vrot.lane.b32.xlu0 %v89_v26, %s126_s12 }
  0xef   :  { %v52_v27 = vpop.permute.xlu0 %51  ;;  %v54_v28 = vpop.permute.xlu1 %53 }
  0xf0   :  { %v57_v29 = vsel %vm55_vm6, %v54_v28, %v52_v27  ;;  %v56_v35 = vsel %vm55_vm6, %v52_v27, %v54_v28 }
  0xf1   :  { %v62_v32 = vsel %vm19_vm7, %v57_v29, 0.0  ;;  %v67_v43 = vadd.f32 %v65_v39, %v56_v35 }
  0xf2   :  { %v66_v36 = vadd.f32 %v64_v33, %v62_v32 }
  0xf3   :  { %v69_v30 = vpop.permute.xlu0 %68  ;;  %v71_v31 = vpop.permute.xlu1 %70 }
  0xf4   :  { %v74_v34 = vsel %vm72_vm8, %v71_v31, %v69_v30  ;;  %v73_v40 = vsel %vm72_vm8, %v69_v30, %v71_v31 }
  0xf5   :  { %v80_v41 = vsel %vm22_vm9, %v74_v34, 0.0  ;;  %v81_v44 = vadd.f32 %v73_v40, %v66_v36 }
  0xf6   :  { %v82_v47 = vadd.f32 %v80_v41, %v67_v43 }
  0xf7   :  { %v94_v37 = vpop.permute.xlu1 %93  ;;  %v92_v38 = vpop.permute.xlu0 %91  ;;  %v83_v55 = vand.u32 2147483647, %v81_v44 }
  0xf8   :  { %v96_v42 = vsel %vm55_vm6, %v94_v37, %v92_v38  ;;  %v95_v51 = vsel %vm55_vm6, %v92_v38, %v94_v37  ;;  %v84_v57 = vand.u32 2147483647, %v82_v47 }
  0xf9   :  { %v97_v48 = vsel %vm19_vm7, %v96_v42, 0.0 }
  0xfb   :  { %v102_v45 = vpop.permute.xlu1 %101  ;;  %v100_v46 = vpop.permute.xlu0 %99 }
  0xfc   :  { %v103_v49 = vsel %vm72_vm8, %v100_v46, %v102_v45  ;;  %v104_v50 = vsel %vm72_vm8, %v102_v45, %v100_v46 }
  0xfd   :  { %v106_v52 = vsel %vm22_vm9, %v104_v50, 0.0  ;;  %v107_v53 = vsub.f32 %v97_v48, %v103_v49 }
  0xfe   :  { %v108_v54 = vsub.f32 %v95_v51, %v106_v52 }
  0xff   :  { %v109_v56 = vand.u32 2147483647, %v107_v53 }
 0x100   :  { %v110_v58 = vand.u32 2147483647, %v108_v54 }
 0x101   :  { %v111_v59 = vadd.f32 %v109_v56, %v83_v55 }
 0x102   :  { %v112_v60 = vadd.f32 %v110_v58, %v84_v57 }
 0x103   :  { %113 = vst [vmem:[%s187_s1] sm:$0xff] %v111_v59 }
 0x104   :  { %114 = vst [vmem:[%s187_s1 + $0x8] sm:$0xff] %v112_v60 }

</bundles_post_ra>
